<compile_context>
chip_gen: v7x
topology: tpu7x:2x2x1
jax: 0.10.0
libtpu: 0.0.40
codegen_flags: <defaults>
</compile_context>

<pallas_src>
import math
from functools import partial

import jax
import jax.numpy as jnp
from jax import lax
from jax.experimental import pallas as pl
from jax.experimental.pallas import tpu as pltpu


# ----------------------------------------------------------------------------
# VMEM budgeting helpers.
# ----------------------------------------------------------------------------
def _vmem_limit_bytes(per_block_bytes):
    """Scoped-VMEM limit: 2x (double-buffered pipeline) + headroom, clamped."""
    return int(min(max(2 * per_block_bytes + (8 << 20), 32 << 20), 96 << 20))


def _pick_block_q(Sq, Skv, E, num_heads, q_bytes, kv_bytes, ctx_bytes,
                  probs_bytes, want, budget_bytes=48 << 20):
    """Largest q tile whose double-buffered attention blocks fit the budget."""
    bq = min(want, Sq)
    while True:
        per = (bq * E * q_bytes + 2 * Skv * E * kv_bytes + Skv * 4
               + bq * E * ctx_bytes + num_heads * bq * Skv * probs_bytes)
        if 2 * per <= budget_bytes or bq <= 8:
            return bq, per
        bq = max(8, bq // 2)


# ----------------------------------------------------------------------------
# Parameter preparation (done once, outside the forward pass).
#   torch nn.Linear stores weight as (out, in); we store it as (in, out) in
#   mm_dtype so kernels contract on the natural inner dim with no transpose
#   and no per-tile cast, and half the weight DMA/VMEM bytes when bf16.
# ----------------------------------------------------------------------------
def prepare_gcap_params(params, mm_dtype=jnp.bfloat16):
    return {
        "wq_t": jnp.asarray(params["wq"].T, mm_dtype),   # (hidden, hidden)
        "bq": jnp.asarray(params["bq"], jnp.float32).reshape(1, -1),
        "wk_t": jnp.asarray(params["wk"].T, mm_dtype),   # (enc_hidden, hidden)
        "bk": jnp.asarray(params["bk"], jnp.float32).reshape(1, -1),
        "wv_t": jnp.asarray(params["wv"].T, mm_dtype),   # (enc_hidden, hidden)
        "bv": jnp.asarray(params["bv"], jnp.float32).reshape(1, -1),
    }


# ----------------------------------------------------------------------------
# Kernel 1: y = x @ W + b   (W already (K, N), already mm_dtype), M/N tiled.
# ----------------------------------------------------------------------------
def _linear_kernel(x_ref, w_ref, b_ref, o_ref):
    x = x_ref[...].astype(w_ref.dtype)          # (tm, K) cast to matmul dtype
    y = jnp.dot(x, w_ref[...], preferred_element_type=jnp.float32)
    o_ref[...] = (y + b_ref[...]).astype(o_ref.dtype)


def pallas_linear(x, w_t, b, *, out_dtype, block_m=512, block_n=512):
    """x: (M, K) fp32, w_t: (K, N) mm_dtype, b: (1, N) fp32 -> (M, N) out_dtype."""
    M, K = x.shape
    N = w_t.shape[1]
    bm = M if M <= block_m else block_m
    bn = N if N <= block_n else block_n
    per_block = (bm * K * x.dtype.itemsize + K * bn * w_t.dtype.itemsize
                 + bn * 4 + bm * bn * jnp.dtype(out_dtype).itemsize)
    return pl.pallas_call(
        _linear_kernel,
        out_shape=jax.ShapeDtypeStruct((M, N), out_dtype),
        grid=(pl.cdiv(M, bm), pl.cdiv(N, bn)),
        in_specs=[
            pl.BlockSpec((bm, K), lambda i, j: (i, 0)),
            pl.BlockSpec((K, bn), lambda i, j: (0, j)),
            pl.BlockSpec((1, bn), lambda i, j: (0, j)),
        ],
        out_specs=pl.BlockSpec((bm, bn), lambda i, j: (i, j)),
        compiler_params=pltpu.CompilerParams(
            dimension_semantics=("parallel", "parallel"),
            vmem_limit_bytes=_vmem_limit_bytes(per_block)),
    )(x, w_t, b)


# ----------------------------------------------------------------------------
# Kernel 2: fused K/V projection — two weights, two outputs, one x read.
# ----------------------------------------------------------------------------
def _linear_kv_kernel(x_ref, wk_ref, bk_ref, wv_ref, bv_ref, k_ref, v_ref):
    x = x_ref[...].astype(wk_ref.dtype)         # (tm, K)
    k = jnp.dot(x, wk_ref[...], preferred_element_type=jnp.float32) + bk_ref[...]
    v = jnp.dot(x, wv_ref[...], preferred_element_type=jnp.float32) + bv_ref[...]
    k_ref[...] = k.astype(k_ref.dtype)
    v_ref[...] = v.astype(v_ref.dtype)


def pallas_linear_kv(x, wk_t, bk, wv_t, bv, *, out_dtype, block_m=512,
                     block_n=512):
    """x: (M, K) fp32, wk_t/wv_t: (K, N) mm_dtype -> ((M, N), (M, N)) out_dtype."""
    M, K = x.shape
    N = wk_t.shape[1]
    bm = M if M <= block_m else block_m
    bn = N if N <= block_n else block_n
    ob = jnp.dtype(out_dtype).itemsize
    per_block = (bm * K * x.dtype.itemsize
                 + 2 * (K * bn * wk_t.dtype.itemsize + bn * 4 + bm * bn * ob))
    return pl.pallas_call(
        _linear_kv_kernel,
        out_shape=(jax.ShapeDtypeStruct((M, N), out_dtype),
                   jax.ShapeDtypeStruct((M, N), out_dtype)),
        grid=(pl.cdiv(M, bm), pl.cdiv(N, bn)),
        in_specs=[
            pl.BlockSpec((bm, K), lambda i, j: (i, 0)),   # x not re-DMA'd over j
            pl.BlockSpec((K, bn), lambda i, j: (0, j)),
            pl.BlockSpec((1, bn), lambda i, j: (0, j)),
            pl.BlockSpec((K, bn), lambda i, j: (0, j)),
            pl.BlockSpec((1, bn), lambda i, j: (0, j)),
        ],
        out_specs=(pl.BlockSpec((bm, bn), lambda i, j: (i, j)),
                   pl.BlockSpec((bm, bn), lambda i, j: (i, j))),
        compiler_params=pltpu.CompilerParams(
            dimension_semantics=("parallel", "parallel"),
            vmem_limit_bytes=_vmem_limit_bytes(per_block)),
    )(x, wk_t, bk, wv_t, bv)


# ----------------------------------------------------------------------------
# Kernel 3: attention for one (batch, q-tile), all heads per grid step.
#   q/k/v arrive in (B, S, H*D) layout (no host transposes).  Per-head
#   context is stored directly into its lane slice (no concatenate).
# ----------------------------------------------------------------------------
def _attn_kernel(q_ref, k_ref, v_ref, m_ref, ctx_ref, *maybe_probs,
                 num_heads, head_dim, mm_dtype, exp_dtype, approx_recip):
    probs_ref = maybe_probs[0] if maybe_probs else None
    scale = 1.0 / math.sqrt(head_dim)
    mask = m_ref[0, 0].astype(jnp.float32)      # (1, Skv), broadcasts over rows

    def one_head(q_h, k_h, v_h):
        # scores = q_h @ k_h^T expressed as a K-contraction (no transpose).
        scores = lax.dot_general(q_h, k_h, (((1,), (1,)), ((), ())),
                                 preferred_element_type=jnp.float32)
        scores = scores + mask                                   # (bq, Skv) fp32
        s_max = jnp.max(scores, axis=-1, keepdims=True)
        # NOTE: on a padded tail q-tile the padded rows still flow through exp;
        # their writeback is masked by Pallas so outputs stay correct.
        p = jnp.exp((scores - s_max).astype(exp_dtype))          # bf16 exp on v6e/v7x
        denom = jnp.sum(p.astype(jnp.float32), axis=-1, keepdims=True)
        inv = pl.reciprocal(denom, approx=approx_recip)
        probs = p * inv.astype(p.dtype)
        # dropout(attention_probs) is identity in eval mode; head_mask=None.
        ctx_h = jnp.dot(probs.astype(mm_dtype), v_h,
                        preferred_element_type=jnp.float32)      # (bq, D) fp32
        return probs, ctx_h

    if head_dim % 128 == 0:
        # Lane-aligned heads: dynamic (fori) loop keeps code size / live ranges
        # bounded for realistic head counts.
        def body(h, carry):
            off = pl.multiple_of(h * head_dim, head_dim)
            q_h = (q_ref[0, :, pl.ds(off, head_dim)].astype(jnp.float32)
                   * scale).astype(mm_dtype)                     # pre-scaled Q
            k_h = k_ref[0, :, pl.ds(off, head_dim)]
            v_h = v_ref[0, :, pl.ds(off, head_dim)]
            probs, ctx_h = one_head(q_h, k_h, v_h)
            if probs_ref is not None:
                probs_ref[0, h] = probs.astype(probs_ref.dtype)
            ctx_ref[0, :, pl.ds(off, head_dim)] = ctx_h.astype(ctx_ref.dtype)
            return carry
        lax.fori_loop(0, num_heads, body, 0)
    else:
        q_all = q_ref[0]                                         # (bq,  H*D)
        k_all = k_ref[0]                                         # (Skv, H*D)
        v_all = v_ref[0]                                         # (Skv, H*D)
        for h in range(num_heads):                               # static unroll
            sl = slice(h * head_dim, (h + 1) * head_dim)
            q_h = (q_all[:, sl].astype(jnp.float32) * scale).astype(mm_dtype)
            probs, ctx_h = one_head(q_h, k_all[:, sl], v_all[:, sl])
            if probs_ref is not None:
                probs_ref[0, h] = probs.astype(probs_ref.dtype)
            ctx_ref[0, :, sl] = ctx_h.astype(ctx_ref.dtype)      # direct store


def pallas_attention(q, k, v, mask, num_heads, *, out_dtype,
                     output_attentions=True, probs_dtype=None, block_q=256):
    """q: (B, Sq, H*D), k/v: (B, Skv, H*D), mask: (B, 1, 1, Skv)."""
    B, Sq, E = q.shape
    Skv = k.shape[1]
    D = E // num_heads
    mm_dtype = q.dtype
    exp_dtype = jnp.bfloat16 if mm_dtype == jnp.bfloat16 else jnp.float32
    approx_recip = mm_dtype != jnp.float32
    if probs_dtype is None:
        probs_dtype = mm_dtype
    pb = jnp.dtype(probs_dtype).itemsize if output_attentions else 0
    bq, per_block = _pick_block_q(
        Sq, Skv, E, num_heads,
        q_bytes=q.dtype.itemsize, kv_bytes=k.dtype.itemsize,
        ctx_bytes=jnp.dtype(out_dtype).itemsize, probs_bytes=pb, want=block_q)

    kernel = partial(_attn_kernel, num_heads=num_heads, head_dim=D,
                     mm_dtype=mm_dtype, exp_dtype=exp_dtype,
                     approx_recip=approx_recip)
    in_specs = [
        pl.BlockSpec((1, bq, E), lambda b, i: (b, i, 0)),
        pl.BlockSpec((1, Skv, E), lambda b, i: (b, 0, 0)),
        pl.BlockSpec((1, Skv, E), lambda b, i: (b, 0, 0)),
        pl.BlockSpec((1, 1, 1, Skv), lambda b, i: (b, 0, 0, 0)),
    ]
    cp = pltpu.CompilerParams(
        dimension_semantics=("parallel", "parallel"),
        vmem_limit_bytes=_vmem_limit_bytes(per_block))

    if output_attentions:
        ctx, probs = pl.pallas_call(
            kernel,
            out_shape=(jax.ShapeDtypeStruct((B, Sq, E), out_dtype),
                       jax.ShapeDtypeStruct((B, num_heads, Sq, Skv), probs_dtype)),
            grid=(B, pl.cdiv(Sq, bq)),
            in_specs=in_specs,
            out_specs=(pl.BlockSpec((1, bq, E), lambda b, i: (b, i, 0)),
                       pl.BlockSpec((1, num_heads, bq, Skv),
                                    lambda b, i: (b, 0, i, 0))),
            compiler_params=cp,
        )(q, k, v, mask)
        return ctx, probs

    ctx = pl.pallas_call(
        kernel,
        out_shape=jax.ShapeDtypeStruct((B, Sq, E), out_dtype),
        grid=(B, pl.cdiv(Sq, bq)),
        in_specs=in_specs,
        out_specs=pl.BlockSpec((1, bq, E), lambda b, i: (b, i, 0)),
        compiler_params=cp,
    )(q, k, v, mask)
    return ctx, None


# ----------------------------------------------------------------------------
# GCapMHA forward (cross-attention).  `prepped` comes from prepare_gcap_params.
# ----------------------------------------------------------------------------
def gcap_mha_forward(
    hidden_states,            # (B, Sq, hidden)   fp32
    encoder_hidden_states,    # (B, Skv, enc_hidden) fp32
    encoder_attention_mask,   # (B, 1, 1, Skv)    additive mask
    prepped,                  # prepared (transposed, mm_dtype) parameters
    num_heads,
    output_attentions=True,
    block_q=256,
):
    B, Sq, hidden = hidden_states.shape
    _, Skv, enc_hidden = encoder_hidden_states.shape
    mm_dtype = prepped["wq_t"].dtype

    # Q projection (outputs emitted in mm_dtype — consumed only by attention).
    q = pallas_linear(hidden_states.reshape(B * Sq, hidden),
                      prepped["wq_t"], prepped["bq"], out_dtype=mm_dtype)

    # Fused K/V projection: reads encoder_hidden_states once.
    k, v = pallas_linear_kv(encoder_hidden_states.reshape(B * Skv, enc_hidden),
                            prepped["wk_t"], prepped["bk"],
                            prepped["wv_t"], prepped["bv"], out_dtype=mm_dtype)

    # Keep (B, S, H*D) layout — reshapes only, no HBM transposes.
    q = q.reshape(B, Sq, hidden)
    k = k.reshape(B, Skv, hidden)
    v = v.reshape(B, Skv, hidden)

    ctx, probs = pallas_attention(
        q, k, v, encoder_attention_mask, num_heads,
        out_dtype=hidden_states.dtype, output_attentions=output_attentions,
        block_q=block_q)

    # past_key_value kept lane-dense (B, Skv, H*D) — same data as PyTorch's
    # (B, H, Skv, D), no standalone HBM transpose round-trips.
    # TODO(synk): emit (B, H, Skv, D) if a consumer requires head-major layout.
    past_key_value = (k, v)
    return ctx, probs, past_key_value


# ----------------------------------------------------------------------------
# Pure-JAX fp32 reference (mirrors the PyTorch code) for a correctness check.
# ----------------------------------------------------------------------------
def reference_forward(hidden_states, encoder_hidden_states, mask, params, num_heads):
    B, Sq, hidden = hidden_states.shape
    _, Skv, _ = encoder_hidden_states.shape
    D = hidden // num_heads

    def lin(x, w, b):
        return x @ w.T + b

    def tfs(x, S):
        return x.reshape(B, S, num_heads, D).transpose(0, 2, 1, 3)

    q = tfs(lin(hidden_states, params["wq"], params["bq"]), Sq)
    k = tfs(lin(encoder_hidden_states, params["wk"], params["bk"]), Skv)
    v = tfs(lin(encoder_hidden_states, params["wv"], params["bv"]), Skv)

    scores = jnp.einsum("bhqd,bhkd->bhqk", q, k) / math.sqrt(D)
    scores = scores + mask
    probs = jax.nn.softmax(scores, axis=-1)
    ctx = jnp.einsum("bhqk,bhkd->bhqd", probs, v)
    ctx = ctx.transpose(0, 2, 1, 3).reshape(B, Sq, hidden)
    return ctx, probs


if __name__ == "__main__":
    # Small config consistent with the module's __init__:
    hidden_size = 32
    encoder_hidden_size = 48
    num_attention_heads = 4
    B, Sq, Skv = 2, 8, 16

    key = jax.random.PRNGKey(0)
    k_hs, k_ehs, k_wq, k_wk, k_wv, k_bq, k_bk, k_bv, k_m = jax.random.split(key, 9)

    hidden_states = jax.random.normal(k_hs, (B, Sq, hidden_size), jnp.float32)
    encoder_hidden_states = jax.random.normal(
        k_ehs, (B, Skv, encoder_hidden_size), jnp.float32)

    # Additive encoder attention mask: 0 for keep, -1e4 for masked positions.
    keep = jax.random.bernoulli(k_m, 0.8, (B, 1, 1, Skv))
    encoder_attention_mask = jnp.where(keep, 0.0, -1e4).astype(jnp.float32)

    params = {
        "wq": 0.02 * jax.random.normal(k_wq, (hidden_size, hidden_size), jnp.float32),
        "bq": 0.02 * jax.random.normal(k_bq, (hidden_size,), jnp.float32),
        "wk": 0.02 * jax.random.normal(k_wk, (hidden_size, encoder_hidden_size), jnp.float32),
        "bk": 0.02 * jax.random.normal(k_bk, (hidden_size,), jnp.float32),
        "wv": 0.02 * jax.random.normal(k_wv, (hidden_size, encoder_hidden_size), jnp.float32),
        "bv": 0.02 * jax.random.normal(k_bv, (hidden_size,), jnp.float32),
    }

    ref_ctx, ref_probs = reference_forward(
        hidden_states, encoder_hidden_states, encoder_attention_mask,
        params, num_attention_heads)

    # --- Path 1: bf16 weights/activations/probs (production recommendation) ---
    prepped_bf16 = prepare_gcap_params(params, jnp.bfloat16)
    ctx_bf, probs_bf, past_kv = gcap_mha_forward(
        hidden_states, encoder_hidden_states, encoder_attention_mask,
        prepped_bf16, num_attention_heads, output_attentions=True)
    jax.block_until_ready(ctx_bf)
    jax.block_until_ready(probs_bf)

    assert ctx_bf.shape == (B, Sq, hidden_size)
    assert ctx_bf.dtype == jnp.float32
    assert probs_bf.shape == (B, num_attention_heads, Sq, Skv)
    assert probs_bf.dtype == jnp.bfloat16
    assert past_kv[0].shape == (B, Skv, hidden_size)      # lane-dense K/V layout
    assert past_kv[1].shape == (B, Skv, hidden_size)
    # bf16 matmul operands + bf16 exp + approx reciprocal -> relaxed tolerance.
    assert jnp.allclose(ctx_bf, ref_ctx, atol=2e-2, rtol=2e-2)
    assert jnp.allclose(probs_bf.astype(jnp.float32), ref_probs, atol=2e-2, rtol=2e-2)

    # --- Path 1b: output_attentions=False (probs write skipped entirely) ---
    ctx_na, probs_na, _ = gcap_mha_forward(
        hidden_states, encoder_hidden_states, encoder_attention_mask,
        prepped_bf16, num_attention_heads, output_attentions=False)
    jax.block_until_ready(ctx_na)
    assert probs_na is None
    assert jnp.allclose(ctx_na, ctx_bf, atol=1e-5, rtol=1e-5)

    # --- Path 2: fp32 everywhere, exact reciprocal (tight check) ---
    prepped_f32 = prepare_gcap_params(params, jnp.float32)
    ctx_f32, probs_f32, _ = gcap_mha_forward(
        hidden_states, encoder_hidden_states, encoder_attention_mask,
        prepped_f32, num_attention_heads, output_attentions=True)
    jax.block_until_ready(ctx_f32)
    jax.block_until_ready(probs_f32)
    assert jnp.allclose(ctx_f32, ref_ctx, atol=1e-3, rtol=1e-3)
    assert jnp.allclose(probs_f32, ref_probs, atol=1e-3, rtol=1e-3)

    print("KERNEL_OK")
</pallas_src>

<mosaic_0001>
module attributes {stable_mosaic.version = 11 : i64} {
  func.func @_linear_kernel(%arg0: i32, %arg1: i32, %arg2: memref<16x32xf32, #tpu.memory_space<vmem>>, %arg3: memref<32x32xbf16, #tpu.memory_space<vmem>>, %arg4: memref<1x32xf32, #tpu.memory_space<vmem>>, %arg5: memref<16x32xbf16, #tpu.memory_space<vmem>>) attributes {dimension_semantics = [#tpu.dimension_semantics<parallel>, #tpu.dimension_semantics<parallel>], iteration_bounds = array<i64: 1, 1>, scalar_prefetch = 0 : i64, scratch_operands = 0 : i64, tpu.core_type = #tpu.core_type<tc>, window_params = [{transform_indices = @transform_0, window_bounds = array<i64: 16, 32>}, {transform_indices = @transform_1, window_bounds = array<i64: 32, 32>}, {transform_indices = @transform_2, window_bounds = array<i64: 1, 32>}, {transform_indices = @transform_3, window_bounds = array<i64: 16, 32>}]} {
    %c0 = arith.constant 0 : index
    %c0_0 = arith.constant 0 : index
    %0 = vector.load %arg2[%c0, %c0_0] : memref<16x32xf32, #tpu.memory_space<vmem>>, vector<16x32xf32>
    %1 = arith.truncf %0 : vector<16x32xf32> to vector<16x32xbf16>
    %c0_1 = arith.constant 0 : index
    %c0_2 = arith.constant 0 : index
    %2 = vector.load %arg3[%c0_1, %c0_2] : memref<32x32xbf16, #tpu.memory_space<vmem>>, vector<32x32xbf16>
    %cst = arith.constant dense<0.000000e+00> : vector<16x32xf32>
    %3 = tpu.matmul %1, %2, %cst {dimension_numbers = #tpu.dot_dimension_numbers<[1], [0], [0], [1], [0, 0, 1, 1], [], []>} : vector<16x32xbf16>, vector<32x32xbf16>, vector<16x32xf32> -> vector<16x32xf32>
    %c0_3 = arith.constant 0 : index
    %c0_4 = arith.constant 0 : index
    %4 = vector.load %arg4[%c0_3, %c0_4] : memref<1x32xf32, #tpu.memory_space<vmem>>, vector<1x32xf32>
    %5 = vector.broadcast %4 : vector<1x32xf32> to vector<16x32xf32>
    %6 = arith.addf %3, %5 : vector<16x32xf32>
    %7 = arith.truncf %6 : vector<16x32xf32> to vector<16x32xbf16>
    %c0_5 = arith.constant 0 : index
    %c0_6 = arith.constant 0 : index
    %8 = vector.load %arg5[%c0_5, %c0_6] : memref<16x32xbf16, #tpu.memory_space<vmem>>, vector<16x32xbf16>
    tpu.vector_store %arg5[%c0_5, %c0_6], %7 {strides = array<i32>} : memref<16x32xbf16, #tpu.memory_space<vmem>>, vector<16x32xbf16>,
    return
  }
  func.func @transform_0(%arg0: i32, %arg1: i32) -> (i32, i32) {
    %c0_i32 = arith.constant 0 : i32
    %c0_i32_0 = arith.constant 0 : i32
    return %arg0, %c0_i32 : i32, i32
  }
  func.func @transform_1(%arg0: i32, %arg1: i32) -> (i32, i32) {
    %c0_i32 = arith.constant 0 : i32
    %c0_i32_0 = arith.constant 0 : i32
    return %c0_i32, %arg1 : i32, i32
  }
  func.func @transform_2(%arg0: i32, %arg1: i32) -> (i32, i32) {
    %c0_i32 = arith.constant 0 : i32
    %c0_i32_0 = arith.constant 0 : i32
    return %c0_i32, %arg1 : i32, i32
  }
  func.func @transform_3(%arg0: i32, %arg1: i32) -> (i32, i32) {
    %c0_i32 = arith.constant 0 : i32
    return %arg0, %arg1 : i32, i32
  }
}

</mosaic_0001>

<bundles_post_ra>
// kernel: tpu_custom_call.1
= control target key start
LH: loop header
LB: loop body
LE: loop exit
PB: predicated region body
PF: predicated region fallthrough
CT: control target
= control target key end

     0   :  { %8 = vsyncpa [#allocation3], 0  ;;  %s320_s0 = inlined_call_operand.hbm [shape: f32[16,32], index: 0, kind: input, shape index: {}]   ;;  %s321_s1 = inlined_call_operand.hbm [shape: bf16[32,32], index: 1, kind: input, shape index: {}]   ;;  %s322_s2 = inlined_call_operand.vmem [shape: f32[1,32], index: 2, kind: input, shape index: {}]   ;;  %s323_s3 = inlined_call_operand.hbm [shape: bf16[16,32], index: 3, kind: output, shape index: {}]  }
   0x1   :  { %9 = vsyncpa [#allocation6], 0 }
   0x2   :  { %10 = vsyncpa [#allocation4], 0  ;;  %s246_s12 = smov [#allocation2]   ;;  %s174_s16 = scalar_lea.hbm %s320_s0, 256 }
   0x3   :  { %s16_s13 = sshll.u32 %s246_s12, 4  ;;  %p175_p0 = scmp.ne.s32.totalorder %s320_s0, %s174_s16  ;;  %s17_s13 = int_to_ptr.vmem [resolvable:$true] %s16_s13 }
   0x4   :  { %p178_p1 = scmp.lt.u32.totalorder %s174_s16, %s320_s0 }
   0x6   :  { %p180_p2 = pnand %p178_p1, %p175_p0 }
   0x8   :  { %183 = shalt.err (!%p180_p2)
}
   0x9   :  { %s184_s21 = scalar_lea.vmem %s17_s13, 256  ;;  %p189_p4 = scmp.lt.s32.totalorder %s17_s13, %s17_s13 }
   0xa   :  { %p185_p3 = scmp.ne.s32.totalorder %s17_s13, %s184_s21  ;;  %p190_p5 = scmp.lt.s32.totalorder %s184_s21, %s184_s21 }
   0xc   :  { %p191_p6 = por %p190_p5, %p189_p4 }
   0xe   :  { %p192_p7 = pnand %p191_p6, %p185_p3 }
  0x10   :  { %195 = shalt.err (!%p192_p7)
}
  0x11   :  { %s247_s22 = smov 128   ;;  %s248_s23 = smov 8  }
  0x12   :  { %22 = dma.hbm_to_vmem [thread:$0]  %s320_s0, 256, %s17_s13, [#allocation3], %s247_s22, %s247_s22, %s248_s23  }
  0x13   :  { %s249_s26 = smov [#allocation5]   ;;  %s196_s30 = scalar_lea.hbm %s321_s1, 256 }
  0x14   :  { %s28_s27 = sshll.u32 %s249_s26, 4  ;;  %p197_p8 = scmp.ne.s32.totalorder %s321_s1, %s196_s30  ;;  %s29_s27 = int_to_ptr.vmem [resolvable:$true] %s28_s27 }
  0x15   :  { %p200_p9 = scmp.lt.u32.totalorder %s196_s30, %s321_s1 }
  0x17   :  { %p202_p10 = pnand %p200_p9, %p197_p8 }
  0x19   :  { %205 = shalt.err (!%p202_p10)
}
  0x1a   :  { %s206_s8 = scalar_lea.vmem %s29_s27, 256  ;;  %p211_p12 = scmp.lt.s32.totalorder %s29_s27, %s29_s27 }
  0x1b   :  { %p207_p11 = scmp.ne.s32.totalorder %s29_s27, %s206_s8  ;;  %p212_p13 = scmp.lt.s32.totalorder %s206_s8, %s206_s8 }
  0x1d   :  { %p213_p0 = por %p212_p13, %p211_p12 }
  0x1f   :  { %p214_p1 = pnand %p213_p0, %p207_p11 }
  0x21   :  { %217 = shalt.err (!%p214_p1)
}
  0x22   :  { %s250_s0 = smov 64   ;;  %s251_s9 = smov 4  }
  0x23   :  { %34 = dma.hbm_to_vmem [thread:$0]  %s321_s1, 256, %s29_s27, [#allocation6], %s250_s0, %s250_s0, %s251_s9  }
  0x24   :  { %240 = dma.done.wait [#allocation3], 256  }
  0x25   :  { %241 = vsyncadd [#allocation3], 4294967040 }
  0x26   :  { %242 = dma.done.wait [#allocation6], 256  }
  0x27   :  { %243 = vsyncadd [#allocation6], 4294967040  ;;  %v252_v0 = vmov 0.0   ;;  %vm253_vm0 = vmmov 0   ;;  %v172_v1 = vld [vmem:[#allocation5] sm:$0xff]   ;;  %v173_v2 = vld [vmem:[#allocation5 + $0x8] sm:$0xff]  }
  0x28   :  { %155 = vmatprep.subr.bf16.mxu0 %v252_v0  ;;  %159 = vmatprep.mubr.msk.bf16.mxu0 %vm253_vm0, %v252_v0  ;;  %v44_v3 = vld [vmem:[#allocation2] sm:$0xff]  ;;  %v45_v4 = vld [vmem:[#allocation2 + $0x8] sm:$0xff]  ;;  %vm70_vm1 = vcmask 261120   ;;  %vm123_vm2 = vcmask 257024   ;;  %s254_s13 = smov [#allocation7]  }
  0x29   :  { %156 = vmatpush3.bf16.msra.mxu0 %v172_v1  ;;  %v46_v5 = vpack.c.bf16 %v45_v4, %v44_v3  ;;  %v144_v6 = vld [vmem:[%s322_s2] ss:$0 sm:$0xff]  ;;  %s131_s14 = sshll.u32 %s254_s13, 4  ;;  %s132_s14 = int_to_ptr.vmem [resolvable:$true] %s131_s14 }
  0x2a   :  { %157 = vmatprep.subr.bf16.mxu0 %v252_v0  ;;  %s218_s15 = scalar_lea.vmem %s132_s14, 128  ;;  %p223_p3 = scmp.lt.s32.totalorder %s132_s14, %s132_s14 }
  0x2b   :  { %p219_p2 = scmp.ne.s32.totalorder %s132_s14, %s218_s15  ;;  %p224_p4 = scmp.lt.s32.totalorder %s218_s15, %s218_s15 }
  0x2d   :  { %158 = vmatpush3.bf16.msra.mxu0 %v173_v2  ;;  %p225_p5 = por %p224_p4, %p223_p3 }
  0x2f   :  { %p226_p6 = pnand %p225_p5, %p219_p2 }
  0x30   :  { %160 = vmatmul.mubr.msk.bf16.vlgmr.msra.gmra.mrb[0].mxu0 %vm70_vm1, %v46_v5 }
 0x103   :  { %v108_v7 = vpop.f32.mrb[0].mxu0 }
 0x104   :  { %v109_v8 = vadd.f32 %v144_v6, %v108_v7  ;;  %v161_v9 = vpop.f32.mrb[1].mxu0 }
 0x105   :  { %v111_v10 = vpop.f32.mrb[2].mxu0 }
 0x106   :  { %v150_v11 = vpack.c.bf16 %v109_v8, %v109_v8  ;;  %v112_v12 = vadd.f32 %v144_v6, %v111_v10  ;;  %v162_v13 = vpop.f32.mrb[3].mxu0 }
 0x108   :  { %v151_v14 = vpack.c.bf16 %v112_v12, %v112_v12  ;;  %124 = vst.msk [vmem:[#allocation7] sm:$0xf] %vm123_vm2, %v150_v11 }
 0x10a   :  { %125 = vst.msk [vmem:[#allocation7 + $0x4] sm:$0xf] %vm123_vm2, %v151_v14 }
 0x10b   :  { %229 = shalt.err (!%p226_p6)
}
 0x10c   :  { %s230_s17 = scalar_lea.hbm %s323_s3, 128 }
 0x10d   :  { %p231_p7 = scmp.ne.s32.totalorder %s323_s3, %s230_s17  ;;  %p234_p8 = scmp.lt.u32.totalorder %s230_s17, %s323_s3 }
 0x10f   :  { %p236_p9 = pnand %p234_p8, %p231_p7 }
 0x111   :  { %239 = shalt.err (!%p236_p9)
}
 0x112   :  { %137 = dma.vmem_to_hbm [thread:$0]  %s132_s14, 128, %s323_s3, [#allocation4], %s250_s0, %s250_s0, %s251_s9  }
 0x113   :  { %244 = dma.done.wait [#allocation4], 128  }
 0x114   :  { %245 = vsyncadd [#allocation4], 4294967168 }
 0x115   :  { %141 = vsyncpa [#allocation3], 1 }
 0x116   :  { %142 = vsyncpa [#allocation6], 1 }
 0x117   :  { %143 = vsyncpa [#allocation4], 1 }

</bundles_post_ra>
